<compile_context>
chip_gen: v7x
topology: tpu7x:2x2x1
jax: 0.10.0
libtpu: 0.0.40
codegen_flags: <defaults>
</compile_context>

<pallas_src>
import jax
import jax.numpy as jnp
import numpy as np
from jax.experimental import pallas as pl
from jax.experimental.pallas import tpu as pltpu


def _round_up(x, m):
    return ((x + m - 1) // m) * m


def _pad_cols(a, n):
    if a.shape[-1] == n:
        return a
    return jnp.zeros(a.shape[:-1] + (n,), a.dtype).at[..., :a.shape[-1]].set(a)


def _pad_rows(a, n):
    if a.shape[0] == n:
        return a
    return jnp.zeros((n,) + a.shape[1:], a.dtype).at[:a.shape[0]].set(a)


def _merge_kernel(x1_ref, x2_ref, w1a_ref, w1b_ref, b1_ref, w2_ref, b2_ref,
                  z_ref, acc_ref):
    j = pl.program_id(1)  # dim3 (hidden) reduction tile

    @pl.when(j == 0)
    def _init():
        acc_ref[...] = jnp.zeros_like(acc_ref)

    # fc1 on the two un-concatenated halves: x1@w1a + x2@w1b + b1 (f32 accumulate).
    h = (jnp.dot(x1_ref[...], w1a_ref[...], preferred_element_type=jnp.float32)
         + jnp.dot(x2_ref[...], w1b_ref[...], preferred_element_type=jnp.float32)
         + b1_ref[...])
    h = jnp.maximum(h, 0.0)  # ReLU
    # Partial fc2 product for this dim3 tile, accumulated in f32 scratch.
    acc_ref[...] += jnp.dot(h.astype(w2_ref.dtype), w2_ref[...],
                            preferred_element_type=jnp.float32)

    @pl.when(j == pl.num_programs(1) - 1)
    def _finalize():
        z_ref[...] = (acc_ref[...] + b2_ref[...]).astype(z_ref.dtype)


def _tpu_caps():
    """Returns (scoped-VMEM request cap in bytes, #TensorCores to spread the grid over)."""
    cap_bytes, num_cores = 64 << 20, 1  # conservative defaults for unknown gens
    try:
        kind = jax.devices()[0].device_kind.lower()
    except Exception:
        return cap_bytes, num_cores
    if "v5 lite" in kind or "v5e" in kind or "v6" in kind:
        cap_bytes = 100 << 20            # 128 MiB physical VMEM -> generous cap
    elif "7" in kind:
        cap_bytes = 48 << 20             # v7x: 64 MiB physical, keep headroom
        num_cores = 2                    # 2 TCs/chip -> grid length should be even
    return cap_bytes, num_cores


def merge_layer_forward(x1, x2, w1, b1, w2, b2, *, bm=None, bd3=None, use_bf16=False):
    """Fused MergeLayer forward (non_linear=True).

    x1: [B, dim1], x2: [B, dim2]
    w1: [dim1+dim2, dim3], b1: [dim3]     (fc1.weight^T, fc1.bias)
    w2: [dim3, dim4],      b2: [dim4]     (fc2.weight^T, fc2.bias)
    returns (z [B, dim4], None) -- matches PyTorch (z, z_walk=None)
    """
    B, dim1 = x1.shape
    B2, dim2 = x2.shape
    assert B == B2
    K = dim1 + dim2
    assert w1.shape[0] == K
    dim3 = w1.shape[1]
    assert w2.shape[0] == dim3
    dim4 = w2.shape[1]
    out_dtype = x1.dtype

    compute_dtype = jnp.bfloat16 if use_bf16 else x1.dtype
    in_isz = jnp.dtype(compute_dtype).itemsize
    out_isz = jnp.dtype(out_dtype).itemsize

    cap_bytes, num_cores = _tpu_caps()

    # ---- dim3 tiling: pad the hidden dim (never touches HBM as an activation) to a
    # multiple of the tile so every weight block is exact (no garbage columns).
    t3 = min(_round_up(dim3, 128), 512 if bd3 is None else _round_up(bd3, 128))
    t3 = max(128, t3)
    d3p = _round_up(dim3, t3)
    n_d3 = d3p // t3

    # ---- output lane padding only when it is nearly free (<= 12.5% extra bytes).
    n128 = _round_up(dim4, 128)
    n_out = n128 if (n128 * 8 <= dim4 * 9) else dim4

    # ---- weight prep (zero-padded columns/rows contribute exact zeros).
    w1a = _pad_cols(w1[:dim1], d3p).astype(compute_dtype)
    w1b = _pad_cols(w1[dim1:], d3p).astype(compute_dtype)
    b1p = _pad_cols(b1.reshape(1, dim3).astype(jnp.float32), d3p)
    w2p = _pad_cols(_pad_rows(w2, d3p), n_out).astype(compute_dtype)
    b2p = _pad_cols(b2.reshape(1, dim4).astype(jnp.float32), n_out)
    x1c = x1.astype(compute_dtype)
    x2c = x2.astype(compute_dtype)

    # ---- batch tile: as large as the per-generation VMEM budget allows.
    row_align = 16 if compute_dtype == jnp.bfloat16 else 8
    w_bytes = (2 * (K * t3 + t3 * n_out) * in_isz        # double-buffered weight tiles
               + 2 * (t3 + n_out) * 4)                    # f32 bias tiles
    row_bytes = (2 * K * in_isz                           # x1/x2 tiles (2x buffered)
                 + 2 * n_out * out_isz                    # output tile (2x buffered)
                 + max(n_out, 128) * 4                    # f32 accumulator (lane-padded)
                 + t3 * 4                                 # h intermediate (f32)
                 + (t3 * in_isz if use_bf16 else 0))      # h downcast copy for fc2
    budget = cap_bytes - w_bytes - (2 << 20)
    bm_fit = max(row_align, (budget // row_bytes) // row_align * row_align)
    bm_cap = min(bm_fit,
                 _round_up(B, row_align),
                 _round_up(bm, row_align) if bm is not None else bm_fit)
    bm_cap = max(row_align, bm_cap)
    # Make the batch-grid length a multiple of the TensorCore count (v7x: 2).
    n_steps = _round_up(max(pl.cdiv(B, bm_cap), num_cores), num_cores)
    bm_eff = max(row_align, _round_up(pl.cdiv(B, n_steps), row_align))
    bm_eff = min(bm_eff, bm_cap)
    if bm_eff >= B:
        bm_eff = B  # full-array block: always a legal block shape

    grid = (pl.cdiv(B, bm_eff), n_d3)

    vmem_limit = int(min(cap_bytes,
                         max(16 << 20, w_bytes + bm_eff * row_bytes + (2 << 20))))

    cost = pl.CostEstimate(
        flops=2 * B * (K * d3p + d3p * n_out),
        transcendentals=0,
        bytes_accessed=(B * (K * in_isz + n_out * out_isz)
                        + (K * d3p + d3p * n_out) * in_isz
                        + (d3p + n_out) * 4),
    )

    z_full = pl.pallas_call(
        _merge_kernel,
        out_shape=jax.ShapeDtypeStruct((B, n_out), out_dtype),
        grid_spec=pltpu.PrefetchScalarGridSpec(
            num_scalar_prefetch=0,
            grid=grid,
            in_specs=[
                pl.BlockSpec((bm_eff, dim1), lambda i, j: (i, 0)),   # x1 tile
                pl.BlockSpec((bm_eff, dim2), lambda i, j: (i, 0)),   # x2 tile
                pl.BlockSpec((dim1, t3), lambda i, j: (0, j)),       # w1[:dim1] tile
                pl.BlockSpec((dim2, t3), lambda i, j: (0, j)),       # w1[dim1:] tile
                pl.BlockSpec((1, t3), lambda i, j: (0, j)),          # b1 tile
                pl.BlockSpec((t3, n_out), lambda i, j: (j, 0)),      # w2 tile
                pl.BlockSpec((1, n_out), lambda i, j: (0, 0)),       # b2
            ],
            out_specs=pl.BlockSpec((bm_eff, n_out), lambda i, j: (i, 0)),
            scratch_shapes=[pltpu.VMEM((bm_eff, n_out), jnp.float32)],
        ),
        compiler_params=pltpu.CompilerParams(
            dimension_semantics=("parallel", "arbitrary"),
            vmem_limit_bytes=vmem_limit,
        ),
        cost_estimate=cost,
    )(x1c, x2c, w1a, w1b, b1p, w2p, b2p)

    z = z_full[:, :dim4] if n_out != dim4 else z_full
    z_walk = None  # non_linear=True path never produces z_walk
    return z, z_walk
    # TODO(synk): if dim1+dim2 itself grows beyond a few K, add a K reduction axis
    # (separate f32 h accumulator) so x/w1 tiles also stream instead of being
    # fully VMEM-resident per step.


def _xavier_normal(key, fan_in, fan_out, dtype=jnp.float32):
    # Matches torch.nn.init.xavier_normal_ (symmetric in fans); built in [in, out] layout.
    std = float(np.sqrt(2.0 / (fan_in + fan_out)))
    return std * jax.random.normal(key, (fan_in, fan_out), dtype=dtype)


def _reference(x1, x2, w1, b1, w2, b2):
    x_cat = jnp.concatenate([x1, x2], axis=-1)
    h = jnp.maximum(x_cat @ w1 + b1, 0.0)
    return h @ w2 + b2


if __name__ == "__main__":
    key = jax.random.PRNGKey(0)
    ks = jax.random.split(key, 12)

    # --- Test 1: small MergeLayer(dim1, dim2, dim3, dim4) shapes, f32, single tiles.
    B, dim1, dim2, dim3, dim4 = 8, 32, 32, 64, 16
    x1 = jax.random.normal(ks[0], (B, dim1), dtype=jnp.float32)
    x2 = jax.random.normal(ks[1], (B, dim2), dtype=jnp.float32)
    w1 = _xavier_normal(ks[2], dim1 + dim2, dim3)   # fc1.weight^T
    b1 = 0.01 * jax.random.normal(ks[3], (dim3,), dtype=jnp.float32)
    w2 = _xavier_normal(ks[4], dim3, dim4)          # fc2.weight^T
    b2 = 0.01 * jax.random.normal(ks[5], (dim4,), dtype=jnp.float32)

    z, z_walk = merge_layer_forward(x1, x2, w1, b1, w2, b2)
    z = jax.block_until_ready(z)
    np.testing.assert_allclose(np.asarray(z),
                               np.asarray(_reference(x1, x2, w1, b1, w2, b2)),
                               rtol=1e-5, atol=1e-5)
    assert z_walk is None

    # --- Test 2: multi batch-tile grid with a partial trailing block.
    Bb = 300
    xb1 = jax.random.normal(ks[6], (Bb, dim1), dtype=jnp.float32)
    xb2 = jax.random.normal(ks[7], (Bb, dim2), dtype=jnp.float32)
    zb, _ = merge_layer_forward(xb1, xb2, w1, b1, w2, b2, bm=128)
    zb = jax.block_until_ready(zb)
    np.testing.assert_allclose(np.asarray(zb),
                               np.asarray(_reference(xb1, xb2, w1, b1, w2, b2)),
                               rtol=1e-5, atol=1e-5)

    # --- Test 3: multiple dim3 reduction tiles + lane-padded dim4 (120 -> 128).
    d3c, d4c = 256, 120
    w1c = _xavier_normal(ks[8], dim1 + dim2, d3c)
    b1c = 0.01 * jax.random.normal(ks[9], (d3c,), dtype=jnp.float32)
    w2c = _xavier_normal(ks[10], d3c, d4c)
    b2c = 0.01 * jax.random.normal(ks[11], (d4c,), dtype=jnp.float32)
    zc, _ = merge_layer_forward(x1, x2, w1c, b1c, w2c, b2c, bd3=128)
    zc = jax.block_until_ready(zc)
    np.testing.assert_allclose(np.asarray(zc),
                               np.asarray(_reference(x1, x2, w1c, b1c, w2c, b2c)),
                               rtol=1e-5, atol=1e-5)

    # --- Test 4: bf16 operand path (bandwidth win; f32 accumulation), looser tolerance.
    zd, _ = merge_layer_forward(xb1, xb2, w1, b1, w2, b2, use_bf16=True)
    zd = jax.block_until_ready(zd)
    np.testing.assert_allclose(np.asarray(zd),
                               np.asarray(_reference(xb1, xb2, w1, b1, w2, b2)),
                               rtol=5e-2, atol=5e-2)

    # TODO(synk): non_linear=False branch (fc(cat(x1,x2,-2)).squeeze(-1), z_walk + sum)
    # is not implemented; the default MergeLayer path (non_linear=True) is what this covers.
    print("KERNEL_OK")
</pallas_src>

<mosaic_0001>
module attributes {stable_mosaic.version = 11 : i64} {
  func.func @_merge_kernel(%arg0: i32, %arg1: i32, %arg2: memref<8x32xf32, #tpu.memory_space<vmem>>, %arg3: memref<8x32xf32, #tpu.memory_space<vmem>>, %arg4: memref<32x128xf32, #tpu.memory_space<vmem>>, %arg5: memref<32x128xf32, #tpu.memory_space<vmem>>, %arg6: memref<1x128xf32, #tpu.memory_space<vmem>>, %arg7: memref<128x16xf32, #tpu.memory_space<vmem>>, %arg8: memref<1x16xf32, #tpu.memory_space<vmem>>, %arg9: memref<8x16xf32, #tpu.memory_space<vmem>>, %arg10: memref<8x16xf32, #tpu.memory_space<vmem>>) attributes {dimension_semantics = [#tpu.dimension_semantics<parallel>, #tpu.dimension_semantics<arbitrary>], iteration_bounds = array<i64: 1, 1>, scalar_prefetch = 0 : i64, scratch_operands = 1 : i64, tpu.core_type = #tpu.core_type<tc>, window_params = [{transform_indices = @transform_0, window_bounds = array<i64: 8, 32>}, {transform_indices = @transform_1, window_bounds = array<i64: 8, 32>}, {transform_indices = @transform_2, window_bounds = array<i64: 32, 128>}, {transform_indices = @transform_3, window_bounds = array<i64: 32, 128>}, {transform_indices = @transform_4, window_bounds = array<i64: 1, 128>}, {transform_indices = @transform_5, window_bounds = array<i64: 128, 16>}, {pipeline_mode = #tpu.pipeline_mode<synchronous>, transform_indices = @transform_6, window_bounds = array<i64: 1, 16>}, {transform_indices = @transform_7, window_bounds = array<i64: 8, 16>}]} {
    %c0_i32 = arith.constant 0 : i32
    %0 = arith.cmpi eq, %arg1, %c0_i32 : i32
    %1 = arith.extui %0 : i1 to i32
    %c0_i32_0 = arith.constant 0 : i32
    %2 = arith.cmpi ne, %1, %c0_i32_0 : i32
    scf.if %2 {
      %cst_21 = arith.constant 0.000000e+00 : f32
      %23 = vector.broadcast %cst_21 : f32 to vector<8x16xf32>
      %c0_22 = arith.constant 0 : index
      %c0_23 = arith.constant 0 : index
      %24 = vector.load %arg10[%c0_22, %c0_23] : memref<8x16xf32, #tpu.memory_space<vmem>>, vector<8x16xf32>
      tpu.vector_store %arg10[%c0_22, %c0_23], %23 {strides = array<i32>} : memref<8x16xf32, #tpu.memory_space<vmem>>, vector<8x16xf32>,
    } else {
    }
    %c0 = arith.constant 0 : index
    %c0_1 = arith.constant 0 : index
    %3 = vector.load %arg2[%c0, %c0_1] : memref<8x32xf32, #tpu.memory_space<vmem>>, vector<8x32xf32>
    %c0_2 = arith.constant 0 : index
    %c0_3 = arith.constant 0 : index
    %4 = vector.load %arg4[%c0_2, %c0_3] : memref<32x128xf32, #tpu.memory_space<vmem>>, vector<32x128xf32>
    %cst = arith.constant dense<0.000000e+00> : vector<8x128xf32>
    %5 = tpu.matmul %3, %4, %cst {dimension_numbers = #tpu.dot_dimension_numbers<[1], [0], [0], [1], [0, 0, 1, 1], [], []>} : vector<8x32xf32>, vector<32x128xf32>, vector<8x128xf32> -> vector<8x128xf32>
    %c0_4 = arith.constant 0 : index
    %c0_5 = arith.constant 0 : index
    %6 = vector.load %arg3[%c0_4, %c0_5] : memref<8x32xf32, #tpu.memory_space<vmem>>, vector<8x32xf32>
    %c0_6 = arith.constant 0 : index
    %c0_7 = arith.constant 0 : index
    %7 = vector.load %arg5[%c0_6, %c0_7] : memref<32x128xf32, #tpu.memory_space<vmem>>, vector<32x128xf32>
    %cst_8 = arith.constant dense<0.000000e+00> : vector<8x128xf32>
    %8 = tpu.matmul %6, %7, %cst_8 {dimension_numbers = #tpu.dot_dimension_numbers<[1], [0], [0], [1], [0, 0, 1, 1], [], []>} : vector<8x32xf32>, vector<32x128xf32>, vector<8x128xf32> -> vector<8x128xf32>
    %9 = arith.addf %5, %8 : vector<8x128xf32>
    %c0_9 = arith.constant 0 : index
    %c0_10 = arith.constant 0 : index
    %10 = vector.load %arg6[%c0_9, %c0_10] : memref<1x128xf32, #tpu.memory_space<vmem>>, vector<1x128xf32>
    %11 = vector.broadcast %10 : vector<1x128xf32> to vector<8x128xf32>
    %12 = arith.addf %9, %11 : vector<8x128xf32>
    %cst_11 = arith.constant 0.000000e+00 : f32
    %13 = vector.broadcast %cst_11 : f32 to vector<8x128xf32>
    %14 = arith.maximumf %12, %13 : vector<8x128xf32>
    %c0_12 = arith.constant 0 : index
    %c0_13 = arith.constant 0 : index
    %15 = vector.load %arg10[%c0_12, %c0_13] : memref<8x16xf32, #tpu.memory_space<vmem>>, vector<8x16xf32>
    %c0_14 = arith.constant 0 : index
    %c0_15 = arith.constant 0 : index
    %16 = vector.load %arg7[%c0_14, %c0_15] : memref<128x16xf32, #tpu.memory_space<vmem>>, vector<128x16xf32>
    %cst_16 = arith.constant dense<0.000000e+00> : vector<8x16xf32>
    %17 = tpu.matmul %14, %16, %cst_16 {dimension_numbers = #tpu.dot_dimension_numbers<[1], [0], [0], [1], [0, 0, 1, 1], [], []>} : vector<8x128xf32>, vector<128x16xf32>, vector<8x16xf32> -> vector<8x16xf32>
    %18 = arith.addf %15, %17 : vector<8x16xf32>
    %c0_17 = arith.constant 0 : index
    %c0_18 = arith.constant 0 : index
    %19 = vector.load %arg10[%c0_17, %c0_18] : memref<8x16xf32, #tpu.memory_space<vmem>>, vector<8x16xf32>
    tpu.vector_store %arg10[%c0_17, %c0_18], %18 {strides = array<i32>} : memref<8x16xf32, #tpu.memory_space<vmem>>, vector<8x16xf32>,
    %c0_i32_19 = arith.constant 0 : i32
    %20 = arith.cmpi eq, %arg1, %c0_i32_19 : i32
    %21 = arith.extui %20 : i1 to i32
    %c0_i32_20 = arith.constant 0 : i32
    %22 = arith.cmpi ne, %21, %c0_i32_20 : i32
    scf.if %22 {
      %c0_21 = arith.constant 0 : index
      %c0_22 = arith.constant 0 : index
      %23 = vector.load %arg10[%c0_21, %c0_22] : memref<8x16xf32, #tpu.memory_space<vmem>>, vector<8x16xf32>
      %c0_23 = arith.constant 0 : index
      %c0_24 = arith.constant 0 : index
      %24 = vector.load %arg8[%c0_23, %c0_24] : memref<1x16xf32, #tpu.memory_space<vmem>>, vector<1x16xf32>
      %25 = vector.broadcast %24 : vector<1x16xf32> to vector<8x16xf32>
      %26 = arith.addf %23, %25 : vector<8x16xf32>
      %c0_25 = arith.constant 0 : index
      %c0_26 = arith.constant 0 : index
      %27 = vector.load %arg9[%c0_25, %c0_26] : memref<8x16xf32, #tpu.memory_space<vmem>>, vector<8x16xf32>
      tpu.vector_store %arg9[%c0_25, %c0_26], %26 {strides = array<i32>} : memref<8x16xf32, #tpu.memory_space<vmem>>, vector<8x16xf32>,
    } else {
    }
    return
  }
  func.func @transform_0(%arg0: i32, %arg1: i32) -> (i32, i32) {
    %c0_i32 = arith.constant 0 : i32
    %c0_i32_0 = arith.constant 0 : i32
    return %arg0, %c0_i32 : i32, i32
  }
  func.func @transform_1(%arg0: i32, %arg1: i32) -> (i32, i32) {
    %c0_i32 = arith.constant 0 : i32
    %c0_i32_0 = arith.constant 0 : i32
    return %arg0, %c0_i32 : i32, i32
  }
  func.func @transform_2(%arg0: i32, %arg1: i32) -> (i32, i32) {
    %c0_i32 = arith.constant 0 : i32
    %c0_i32_0 = arith.constant 0 : i32
    return %c0_i32, %arg1 : i32, i32
  }
  func.func @transform_3(%arg0: i32, %arg1: i32) -> (i32, i32) {
    %c0_i32 = arith.constant 0 : i32
    %c0_i32_0 = arith.constant 0 : i32
    return %c0_i32, %arg1 : i32, i32
  }
  func.func @transform_4(%arg0: i32, %arg1: i32) -> (i32, i32) {
    %c0_i32 = arith.constant 0 : i32
    %c0_i32_0 = arith.constant 0 : i32
    return %c0_i32, %arg1 : i32, i32
  }
  func.func @transform_5(%arg0: i32, %arg1: i32) -> (i32, i32) {
    %c0_i32 = arith.constant 0 : i32
    %c0_i32_0 = arith.constant 0 : i32
    return %arg1, %c0_i32 : i32, i32
  }
  func.func @transform_6(%arg0: i32, %arg1: i32) -> (i32, i32) {
    %c0_i32 = arith.constant 0 : i32
    %c0_i32_0 = arith.constant 0 : i32
    %c0_i32_1 = arith.constant 0 : i32
    return %c0_i32, %c0_i32_0 : i32, i32
  }
  func.func @transform_7(%arg0: i32, %arg1: i32) -> (i32, i32) {
    %c0_i32 = arith.constant 0 : i32
    %c0_i32_0 = arith.constant 0 : i32
    return %arg0, %c0_i32 : i32, i32
  }
}

</mosaic_0001>

<bundles_post_ra>
// kernel: tpu_custom_call.1
= control target key start
LH: loop header
LB: loop body
LE: loop exit
PB: predicated region body
PF: predicated region fallthrough
CT: control target
= control target key end

     0   :  { %v468_v3 = vmov 0.0|0.0   ;;  %vm469_vm0 = vmmov 0   ;;  %v470_v6 = vmov 0.0   ;;  %s632_s0 = inlined_call_operand.vmem [shape: f32[8,32], index: 0, kind: input, shape index: {}]   ;;  %s633_s1 = inlined_call_operand.vmem [shape: f32[8,32], index: 1, kind: input, shape index: {}]   ;;  %s634_s2 = inlined_call_operand.vmem [shape: f32[32,128], index: 2, kind: input, shape index: {}]   ;;  %s635_s3 = inlined_call_operand.vmem [shape: f32[32,128], index: 3, kind: input, shape index: {}]   ;;  %s636_s4 = inlined_call_operand.vmem [shape: f32[1,128], index: 4, kind: input, shape index: {}]   ;;  %s637_s5 = inlined_call_operand.vmem [shape: f32[128,16], index: 5, kind: input, shape index: {}]   ;;  %s638_s6 = inlined_call_operand.vmem [shape: f32[1,16], index: 6, kind: input, shape index: {}]   ;;  %s639_s7 = inlined_call_operand.hbm [shape: f32[8,16], index: 7, kind: output, shape index: {}]  }
   0x1   :  { %v39_v0 = vld [vmem:[%s635_s3] sm:$0xff]  ;;  %v40_v1 = vld [vmem:[%s635_s3 + $0x8] sm:$0xff]  ;;  %v41_v2 = vld [vmem:[%s635_s3 + $0x10] sm:$0xff]  ;;  %404 = vmatprep.subr.bf16.mxu1 %v468_v3  ;;  %355 = vmatprep.mubr.msk.f32.mxu1 %vm469_vm0, %v470_v6 }
   0x2   :  { %v405_v4 = vpack.c.bf16 %v40_v1, %v39_v0  ;;  %v42_v5 = vld [vmem:[%s635_s3 + $0x18] sm:$0xff]  ;;  %416 = vmatprep.subr.bf16.mxu0 %v468_v3  ;;  %401 = vmatprep.mubr.msk.f32.mxu0 %vm469_vm0, %v470_v6  ;;  %v34_v8 = vld [vmem:[%s634_s2] sm:$0xff]  ;;  %v201_v10 = vld [vmem:[%s637_s5 + $0x8] sm:$0xff] }
   0x3   :  { %v408_v7 = vpack.c.bf16 %v42_v5, %v41_v2  ;;  %v200_v9 = vld [vmem:[%s637_s5] sm:$0xff]  ;;  %v35_v11 = vld [vmem:[%s634_s2 + $0x8] sm:$0xff]  ;;  %v202_v13 = vld [vmem:[%s637_s5 + $0x10] sm:$0xff] }
   0x4   :  { %406 = vmatpush3.bf16.msra.mxu1 %v405_v4  ;;  %v417_v12 = vpack.c.bf16 %v201_v10, %v200_v9  ;;  %v203_v14 = vld [vmem:[%s637_s5 + $0x18] sm:$0xff] }
   0x5   :  { %407 = vmatprep.subr.bf16.mxu1 %v468_v3  ;;  %v420_v15 = vpack.c.bf16 %v203_v14, %v202_v13 }
   0x6   :  { %418 = vmatpush3.bf16.msra.mxu0 %v417_v12 }
   0x7   :  { %12 = vsyncpa [#allocation4], 0  ;;  %v38_v16 = vld [vmem:[%s633_s1] sm:$0xff]  ;;  %vm43_vm1 = vcmask 261120   ;;  %v411_v17 = vpack.c.bf16 %v35_v11, %v34_v8  ;;  %419 = vmatprep.subr.bf16.mxu0 %v468_v3  ;;  %v205_v19 = vld [vmem:[%s637_s5 + $0x28] sm:$0xff]  ;;  %vm31_vm2 = vcmask 130048  }
   0x8   :  { %409 = vmatpush3.bf16.msra.mxu1 %v408_v7  ;;  %v204_v18 = vld [vmem:[%s637_s5 + $0x20] sm:$0xff]  ;;  %v36_v20 = vld [vmem:[%s634_s2 + $0x10] sm:$0xff]  ;;  %v37_v21 = vld [vmem:[%s634_s2 + $0x18] sm:$0xff]  ;;  %32 = vst.msk [vmem:[#allocation2] sm:$0xff] %vm31_vm2, %v470_v6  ;;  %s471_s28 = smov [#allocation3]  }
   0x9   :  { %410 = vmatprep.subr.bf16.mxu1 %v468_v3  ;;  %v423_v22 = vpack.c.bf16 %v205_v19, %v204_v18  ;;  %v414_v23 = vpack.c.bf16 %v37_v21, %v36_v20  ;;  %v206_v24 = vld [vmem:[%s637_s5 + $0x30] sm:$0xff]  ;;  %v207_v25 = vld [vmem:[%s637_s5 + $0x38] sm:$0xff]  ;;  %v33_v27 = vld [vmem:[%s632_s0] sm:$0xff]  ;;  %s308_s1 = sshll.u32 %s471_s28, 4  ;;  %s309_s1 = int_to_ptr.vmem [resolvable:$true] %s308_s1 }
   0xa   :  { %421 = vmatpush3.bf16.msra.mxu0 %v420_v15  ;;  %v426_v26 = vpack.c.bf16 %v207_v25, %v206_v24  ;;  %v208_v28 = vld [vmem:[%s637_s5 + $0x40] sm:$0xff]  ;;  %v209_v29 = vld [vmem:[%s637_s5 + $0x48] sm:$0xff]  ;;  %v210_v31 = vld [vmem:[%s637_s5 + $0x50] sm:$0xff]  ;;  %p449_p1 = scmp.lt.s32.totalorder %s309_s1, %s309_s1 }
   0xb   :  { %356 = vmatmul.mubr.msk.f32.vlgmr.msra.gmra.mrb[0].mxu1 %vm43_vm1, %v38_v16  ;;  %422 = vmatprep.subr.bf16.mxu0 %v468_v3  ;;  %v429_v30 = vpack.c.bf16 %v209_v29, %v208_v28  ;;  %v211_v32 = vld [vmem:[%s637_s5 + $0x58] sm:$0xff]  ;;  %v212_v34 = vld [vmem:[%s637_s5 + $0x60] sm:$0xff]  ;;  %v213_v35 = vld [vmem:[%s637_s5 + $0x68] sm:$0xff] }
   0xc   :  { %412 = vmatpush3.bf16.msra.mxu1 %v411_v17  ;;  %366 = vmatprep.mubr.msk.f32.mxu1 %vm469_vm0, %v470_v6  ;;  %v432_v33 = vpack.c.bf16 %v211_v32, %v210_v31  ;;  %v435_v36 = vpack.c.bf16 %v213_v35, %v212_v34  ;;  %v214_v37 = vld [vmem:[%s637_s5 + $0x70] sm:$0xff]  ;;  %v215_v38 = vld [vmem:[%s637_s5 + $0x78] sm:$0xff]  ;;  %v318_v43 = vld [vmem:[%s636_s4] ss:$0 sm:$0xff]  ;;  %s444_s4 = scalar_lea.vmem %s309_s1, 128 }
   0xd   :  { %413 = vmatprep.subr.bf16.mxu1 %v468_v3  ;;  %v438_v39 = vpack.c.bf16 %v215_v38, %v214_v37  ;;  %v319_v52 = vld [vmem:[%s638_s6] ss:$0 sm:$0xff]  ;;  %p445_p0 = scmp.ne.s32.totalorder %s309_s1, %s444_s4  ;;  %p450_p2 = scmp.lt.s32.totalorder %s444_s4, %s444_s4 }
   0xe   :  { %424 = vmatpush3.bf16.msra.mxu0 %v423_v22 }
   0xf   :  { %425 = vmatprep.subr.bf16.mxu0 %v468_v3  ;;  %v199_v48 = vld [vmem:[#allocation2] sm:$0xff]  ;;  %p451_p3 = por %p450_p2, %p449_p1 }
  0x10   :  { %415 = vmatpush3.bf16.msra.mxu1 %v414_v23 }
  0x11   :  { %p452_p4 = pnand %p451_p3, %p445_p0 }
  0x12   :  { %427 = vmatpush3.bf16.msra.mxu0 %v426_v26 }
  0x13   :  { %367 = vmatmul.mubr.msk.f32.vlgmr.msra.gmra.mrb[2].mxu1 %vm43_vm1, %v33_v27  ;;  %428 = vmatprep.subr.bf16.mxu0 %v468_v3 }
  0x16   :  { %430 = vmatpush3.bf16.msra.mxu0 %v429_v30 }
  0x17   :  { %431 = vmatprep.subr.bf16.mxu0 %v468_v3 }
  0x1a   :  { %433 = vmatpush3.bf16.msra.mxu0 %v432_v33 }
  0x1b   :  { %434 = vmatprep.subr.bf16.mxu0 %v468_v3 }
  0x1e   :  { %436 = vmatpush3.bf16.msra.mxu0 %v435_v36 }
  0x1f   :  { %437 = vmatprep.subr.bf16.mxu0 %v468_v3 }
  0x22   :  { %439 = vmatpush3.bf16.msra.mxu0 %v438_v39 }
  0xde   :  { %v113_v40 = vpop.f32.mrb[0].mxu1 }
  0xdf   :  { %v357_v41 = vpop.f32.mrb[1].mxu1 }
  0xe6   :  { %v186_v42 = vpop.f32.mrb[2].mxu1 }
  0xe7   :  { %v187_v44 = vadd.f32 %v186_v42, %v113_v40  ;;  %v368_v45 = vpop.f32.mrb[3].mxu1 }
  0xe9   :  { %v197_v46 = vadd.f32 %v318_v43, %v187_v44 }
  0xeb   :  { %v198_v47 = vmax.f32 %v197_v46, 0.0 }
  0xed   :  { %402 = vmatmul.mubr.f32.vlgmr.msra.gmra.mrb[0].mxu0 %v198_v47 }
 0x1c0   :  { %v282_v49 = vpop.f32.mrb[0].mxu0 }
 0x1c1   :  { %v286_v50 = vadd.f32 %v282_v49, %v199_v48  ;;  %v403_v51 = vpop.f32.mrb[1].mxu0 }
 0x1c3   :  { %288 = vst.msk [vmem:[#allocation2] sm:$0xff] %vm31_vm2, %v286_v50 }
 0x1ca   :  { %v292_v53 = vld [vmem:[#allocation2] sm:$0xff] }
 0x1cb   :  { %v300_v54 = vadd.f32 %v319_v52, %v292_v53 }
 0x1cd   :  { %301 = vst.msk [vmem:[#allocation3] sm:$0xff] %vm31_vm2, %v300_v54 }
 0x1ce   :  { %455 = shalt.err (!%p452_p4)
}
 0x1cf   :  { %s456_s8 = scalar_lea.hbm %s639_s7, 128 }
 0x1d0   :  { %p457_p5 = scmp.ne.s32.totalorder %s639_s7, %s456_s8  ;;  %p460_p6 = scmp.lt.u32.totalorder %s456_s8, %s639_s7 }
 0x1d2   :  { %p462_p7 = pnand %p460_p6, %p457_p5 }
 0x1d4   :  { %465 = shalt.err (!%p462_p7)
}
 0x1d5   :  { %311 = dma.vmem_to_hbm [thread:$0]  %s309_s1, 128, %s639_s7, [#allocation4]  }
 0x1d6   :  { %466 = dma.done.wait [#allocation4], 128  }
 0x1d7   :  { %467 = vsyncadd [#allocation4], 4294967168 }
 0x1d8   :  { %315 = vsyncpa [#allocation4], 1 }

</bundles_post_ra>
